<compile_context>
chip_gen: v7x
topology: tpu7x:2x2x1
jax: 0.10.0
libtpu: 0.0.40
codegen_flags: <defaults>
</compile_context>

<pallas_src>
import functools
import math

import jax
import jax.numpy as jnp
from jax.experimental import pallas as pl
from jax.experimental.pallas import tpu as pltpu

# -log(1e-4): the only nonzero value log(one_hot_clamped) can take.
_LOG1E4 = math.log(1e4)


def _rce_kernel(pred_ref, labels_ref, out_ref, acc_ref, *, scale, total_n):
    split = pl.program_id(0)          # parallel axis (megacore split)
    step = pl.program_id(1)           # reduction axis over row blocks
    n_steps = pl.num_programs(1)

    @pl.when(step == 0)
    def _():
        acc_ref[...] = jnp.zeros_like(acc_ref)

    logits = pred_ref[...].astype(jnp.float32)           # (bn, C) f32 compute
    labels = labels_ref[...]                              # (bn, 1) int32
    bn, c = logits.shape

    # Softmax over the class axis: one reciprocal per row, multiply per element.
    m = jnp.max(logits, axis=1, keepdims=True)
    e = jnp.exp(logits - m)
    inv = 1.0 / jnp.sum(e, axis=1, keepdims=True)
    p = jnp.clip(e * inv, 1e-7, 1.0)

    # -sum(p * log(one_hot_clamped)) == ln(1e4) * sum_{j != label} p[j]
    class_ids = jax.lax.broadcasted_iota(jnp.int32, (bn, c), 1)
    contrib = jnp.where(class_ids == labels, 0.0, p)
    row_rce = _LOG1E4 * jnp.sum(contrib, axis=1, keepdims=True)     # (bn, 1)

    # Mask rows that only exist because of batch padding.
    row0 = (split * n_steps + step) * bn
    row_ids = row0 + jax.lax.broadcasted_iota(jnp.int32, (bn, 1), 0)
    row_rce = jnp.where(row_ids < total_n, row_rce, 0.0)

    # Per-row accumulation; the expensive cross-sublane reduce happens once below.
    acc_ref[...] += row_rce

    @pl.when(step == n_steps - 1)
    def _():
        partial = scale * jnp.sum(acc_ref[...]) / total_n
        # Lane-dense (8, 128) output block; every element holds this split's partial.
        out_ref[...] = jnp.broadcast_to(partial, out_ref.shape).astype(out_ref.dtype)


def _vmem_capacity_bytes():
    """Per-TensorCore VMEM capacity; conservative fallback if the query fails."""
    try:
        return int(pltpu.get_tpu_info().vmem_capacity_bytes)
    except Exception:
        return 64 << 20   # v7x per-TC figure; safely conservative for v5e/v6e (128 MiB)


def _default_num_splits():
    """2 only on multi-TensorCore-per-device chips (v4/v5p megacore, v7x); else 1.

    On 1-TC chips (v5e/v6e) a split is just a serial loop that adds a second
    init/epilogue and possible extra padding, so default to a single split there.
    """
    try:
        kind = jax.devices()[0].device_kind.lower()
    except Exception:
        return 1
    return 2 if any(tag in kind for tag in ("v4", "v5p", "7")) else 1


def reverse_cross_entropy(pred, labels, *, num_classes, scale=1.0,
                          block_n=None, num_splits=None):
    """RCE loss.  pred: (N, C) float logits (f32 or bf16 -- prefer bf16 on
    bandwidth-bound chips such as v5e; the kernel upcasts in-kernel),
    labels: (N,) int.  Returns a scalar f32."""
    n, c = pred.shape
    assert c == num_classes

    itemsize = jnp.dtype(pred.dtype).itemsize
    sublane = {4: 8, 2: 16, 1: 32}.get(itemsize, 8)       # native sublane tile per dtype
    c_pad = ((c + 127) // 128) * 128                       # lane padding of the class axis

    # Per-row VMEM bytes of one grid step:
    #   double-buffered pred tile + double-buffered labels tile (lane-padded to 128)
    #   + (block_n, 1) accumulator (lane-padded) + ~6 f32 in-kernel temporaries
    #   (upcast logits, e, p, iota, mask, contrib) that the compiler materializes.
    per_row = 2 * c_pad * itemsize + 2 * (128 * 4) + (128 * 4) + 6 * c_pad * 4

    if block_n is None:
        cap = _vmem_capacity_bytes()
        budget = min(int(cap * 0.5), 48 << 20)             # v7x: ~32 MiB, v5e/v6e: 48 MiB
        block_n = max(sublane, min(8192, budget // per_row))
    block_n = max(sublane, (block_n // sublane) * sublane)
    n_up = ((n + sublane - 1) // sublane) * sublane
    block_n = min(block_n, n_up)

    # Split the reduction across TensorCores only where there are >1 per device.
    if num_splits is None:
        num_splits = _default_num_splits()
    num_splits = max(1, min(num_splits, -(-n // block_n)))
    steps = -(-n // (num_splits * block_n))
    n_pad = num_splits * steps * block_n

    if n_pad != n:
        pred = jnp.pad(pred, ((0, n_pad - n), (0, 0)))
        labels = jnp.pad(labels, (0, n_pad - n))
    labels2d = labels.reshape(n_pad, 1).astype(jnp.int32)

    # VMEM limit tracks the real need (+25% slack), clamped to the chip's capacity.
    cap = _vmem_capacity_bytes()
    need = block_n * per_row
    vmem_limit = max(16 << 20, need + max(need // 4, 2 << 20))
    vmem_limit = int(min(vmem_limit, int(cap * 0.9), 96 << 20))

    kernel = functools.partial(_rce_kernel, scale=float(scale), total_n=int(n))

    out = pl.pallas_call(
        kernel,
        out_shape=jax.ShapeDtypeStruct((num_splits * 8, 128), jnp.float32),
        grid_spec=pltpu.PrefetchScalarGridSpec(
            num_scalar_prefetch=0,
            grid=(num_splits, steps),
            in_specs=[
                pl.BlockSpec((block_n, c), lambda s, i: (s * steps + i, 0)),
                pl.BlockSpec((block_n, 1), lambda s, i: (s * steps + i, 0)),
            ],
            out_specs=pl.BlockSpec((8, 128), lambda s, i: (s, 0)),
            scratch_shapes=[pltpu.VMEM((block_n, 1), jnp.float32)],
        ),
        # NOTE: on v7x confirm via xprof that the leading ("parallel") grid axis is
        # really sharded across both TensorCores; if it serializes, switch that axis
        # to pltpu.CORE_PARALLEL (or drive it with pl.core_map over a tensorcore mesh).
        compiler_params=pltpu.CompilerParams(
            dimension_semantics=("parallel", "arbitrary"),
            vmem_limit_bytes=vmem_limit,
        ),
    )(pred, labels2d)

    # Each split wrote its partial into a full (8, 128) block; take one element per split.
    partials = out.reshape(num_splits, 8, 128)[:, 0, 0]
    return jnp.sum(partials)


def _reference(pred, labels, num_classes, scale):
    p = jax.nn.softmax(pred.astype(jnp.float32), axis=1)
    p = jnp.clip(p, 1e-7, 1.0)
    oh = jax.nn.one_hot(labels, num_classes, dtype=jnp.float32)
    oh = jnp.clip(oh, 1e-4, 1.0)
    rce = -jnp.sum(p * jnp.log(oh), axis=1)
    return scale * jnp.mean(rce)


if __name__ == "__main__":
    num_classes = 32
    batch = 16
    scale = 1.0

    key = jax.random.PRNGKey(0)
    kp, kl = jax.random.split(key)
    pred = jax.random.normal(kp, (batch, num_classes), dtype=jnp.float32)
    labels = jax.random.randint(kl, (batch,), 0, num_classes, dtype=jnp.int32)

    # f32 logits.
    out = reverse_cross_entropy(pred, labels, num_classes=num_classes, scale=scale)
    out = jax.block_until_ready(out)
    ref = _reference(pred, labels, num_classes, scale)
    assert jnp.allclose(out, ref, rtol=1e-5, atol=1e-5), (out, ref)

    # bf16 logits (recommended caller-side dtype on bandwidth-bound chips).
    pred_bf16 = pred.astype(jnp.bfloat16)
    out_bf = reverse_cross_entropy(pred_bf16, labels, num_classes=num_classes, scale=scale)
    out_bf = jax.block_until_ready(out_bf)
    ref_bf = _reference(pred_bf16, labels, num_classes, scale)
    assert jnp.allclose(out_bf, ref_bf, rtol=2e-5, atol=2e-5), (out_bf, ref_bf)

    print("KERNEL_OK")
</pallas_src>

<mosaic_0001>
module attributes {stable_mosaic.version = 11 : i64} {
  func.func @_rce_kernel(%arg0: i32, %arg1: i32, %arg2: memref<16x32xf32, #tpu.memory_space<vmem>>, %arg3: memref<16x1xi32, #tpu.memory_space<vmem>>, %arg4: memref<8x128xf32, #tpu.memory_space<vmem>>, %arg5: memref<16x1xf32, #tpu.memory_space<vmem>>) attributes {dimension_semantics = [#tpu.dimension_semantics<parallel>, #tpu.dimension_semantics<arbitrary>], iteration_bounds = array<i64: 1, 1>, scalar_prefetch = 0 : i64, scratch_operands = 1 : i64, tpu.core_type = #tpu.core_type<tc>, window_params = [{transform_indices = @transform_0, window_bounds = array<i64: 16, 32>}, {transform_indices = @transform_1, window_bounds = array<i64: 16, 1>}, {transform_indices = @transform_2, window_bounds = array<i64: 8, 128>}]} {
    %c0_i32 = arith.constant 0 : i32
    %0 = arith.cmpi eq, %arg1, %c0_i32 : i32
    %1 = arith.extui %0 : i1 to i32
    %c0_i32_0 = arith.constant 0 : i32
    %2 = arith.cmpi ne, %1, %c0_i32_0 : i32
    scf.if %2 {
      %cst_19 = arith.constant 0.000000e+00 : f32
      %45 = vector.broadcast %cst_19 : f32 to vector<16x1xf32>
      %c0_20 = arith.constant 0 : index
      %c0_21 = arith.constant 0 : index
      %46 = vector.load %arg5[%c0_20, %c0_21] : memref<16x1xf32, #tpu.memory_space<vmem>>, vector<16x1xf32>
      tpu.vector_store %arg5[%c0_20, %c0_21], %45 {strides = array<i32>} : memref<16x1xf32, #tpu.memory_space<vmem>>, vector<16x1xf32>,
    } else {
    }
    %c0 = arith.constant 0 : index
    %c0_1 = arith.constant 0 : index
    %3 = vector.load %arg2[%c0, %c0_1] : memref<16x32xf32, #tpu.memory_space<vmem>>, vector<16x32xf32>
    %c0_2 = arith.constant 0 : index
    %c0_3 = arith.constant 0 : index
    %4 = vector.load %arg3[%c0_2, %c0_3] : memref<16x1xi32, #tpu.memory_space<vmem>>, vector<16x1xi32>
    %cst = arith.constant dense<0xFF800000> : vector<16xf32>
    %5 = vector.multi_reduction <maximumf>, %3, %cst [1] : vector<16x32xf32> to vector<16xf32>
    %6 = vector.shape_cast %5 : vector<16xf32> to vector<16x1xf32>
    %7 = vector.broadcast %6 : vector<16x1xf32> to vector<16x32xf32>
    %8 = arith.subf %3, %7 : vector<16x32xf32>
    %9 = math.exp %8 : vector<16x32xf32>
    %cst_4 = arith.constant dense<0.000000e+00> : vector<16xf32>
    %10 = vector.multi_reduction <add>, %9, %cst_4 [1] : vector<16x32xf32> to vector<16xf32>
    %11 = vector.shape_cast %10 : vector<16xf32> to vector<16x1xf32>
    %cst_5 = arith.constant 1.000000e+00 : f32
    %12 = vector.broadcast %cst_5 : f32 to vector<16x1xf32>
    %13 = arith.divf %12, %11 : vector<16x1xf32>
    %14 = vector.broadcast %13 : vector<16x1xf32> to vector<16x32xf32>
    %15 = arith.mulf %9, %14 : vector<16x32xf32>
    %cst_6 = arith.constant 1.000000e-07 : f32
    %cst_7 = arith.constant 1.000000e+00 : f32
    %16 = vector.broadcast %cst_6 : f32 to vector<16x32xf32>
    %17 = arith.maximumf %16, %15 : vector<16x32xf32>
    %18 = vector.broadcast %cst_7 : f32 to vector<16x32xf32>
    %19 = arith.minimumf %18, %17 : vector<16x32xf32>
    %20 = tpu.iota {dimensions = array<i32: 1>} : vector<16x32xi32>
    %21 = vector.broadcast %4 : vector<16x1xi32> to vector<16x32xi32>
    %22 = arith.cmpi eq, %20, %21 : vector<16x32xi32>
    %cst_8 = arith.constant 0.000000e+00 : f32
    %23 = vector.broadcast %cst_8 : f32 to vector<16x32xf32>
    %24 = arith.select %22, %23, %19 : vector<16x32xi1>, vector<16x32xf32>
    %cst_9 = arith.constant dense<0.000000e+00> : vector<16xf32>
    %25 = vector.multi_reduction <add>, %24, %cst_9 [1] : vector<16x32xf32> to vector<16xf32>
    %26 = vector.shape_cast %25 : vector<16xf32> to vector<16x1xf32>
    %cst_10 = arith.constant 9.21034049 : f32
    %27 = vector.broadcast %cst_10 : f32 to vector<16x1xf32>
    %28 = arith.mulf %27, %26 : vector<16x1xf32>
    %c1_i32 = arith.constant 1 : i32
    %29 = arith.muli %arg0, %c1_i32 : i32
    %30 = arith.addi %29, %arg1 : i32
    %c16_i32 = arith.constant 16 : i32
    %31 = arith.muli %30, %c16_i32 : i32
    %32 = tpu.iota {dimensions = array<i32: 0>} : vector<16x1xi32>
    %33 = vector.broadcast %31 : i32 to vector<16x1xi32>
    %34 = arith.addi %33, %32 : vector<16x1xi32>
    %c16_i32_11 = arith.constant 16 : i32
    %35 = vector.broadcast %c16_i32_11 : i32 to vector<16x1xi32>
    %36 = arith.cmpi slt, %34, %35 : vector<16x1xi32>
    %cst_12 = arith.constant 0.000000e+00 : f32
    %37 = vector.broadcast %cst_12 : f32 to vector<16x1xf32>
    %38 = arith.select %36, %28, %37 : vector<16x1xi1>, vector<16x1xf32>
    %c0_13 = arith.constant 0 : index
    %c0_14 = arith.constant 0 : index
    %39 = vector.load %arg5[%c0_13, %c0_14] : memref<16x1xf32, #tpu.memory_space<vmem>>, vector<16x1xf32>
    %40 = arith.addf %39, %38 : vector<16x1xf32>
    %c0_15 = arith.constant 0 : index
    %c0_16 = arith.constant 0 : index
    %41 = vector.load %arg5[%c0_15, %c0_16] : memref<16x1xf32, #tpu.memory_space<vmem>>, vector<16x1xf32>
    tpu.vector_store %arg5[%c0_15, %c0_16], %40 {strides = array<i32>} : memref<16x1xf32, #tpu.memory_space<vmem>>, vector<16x1xf32>,
    %c0_i32_17 = arith.constant 0 : i32
    %42 = arith.cmpi eq, %arg1, %c0_i32_17 : i32
    %43 = arith.extui %42 : i1 to i32
    %c0_i32_18 = arith.constant 0 : i32
    %44 = arith.cmpi ne, %43, %c0_i32_18 : i32
    scf.if %44 {
      %c0_19 = arith.constant 0 : index
      %c0_20 = arith.constant 0 : index
      %45 = vector.load %arg5[%c0_19, %c0_20] : memref<16x1xf32, #tpu.memory_space<vmem>>, vector<16x1xf32>
      %46 = vector.shape_cast %45 : vector<16x1xf32> to vector<1x16x1xf32>
      %cst_21 = arith.constant dense<0.000000e+00> : vector<1xf32>
      %47 = vector.multi_reduction <add>, %46, %cst_21 [1, 2] : vector<1x16x1xf32> to vector<1xf32>
      %48 = vector.shape_cast %47 : vector<1xf32> to vector<1x1x1xf32>
      %49 = vector.extract %48[0, 0, 0] : f32 from vector<1x1x1xf32>
      %cst_22 = arith.constant 1.000000e+00 : f32
      %50 = arith.mulf %cst_22, %49 : f32
      %cst_23 = arith.constant 1.600000e+01 : f32
      %51 = arith.divf %50, %cst_23 : f32
      %52 = vector.broadcast %51 : f32 to vector<8x128xf32>
      %c0_24 = arith.constant 0 : index
      %c0_25 = arith.constant 0 : index
      %53 = vector.load %arg4[%c0_24, %c0_25] : memref<8x128xf32, #tpu.memory_space<vmem>>, vector<8x128xf32>
      tpu.vector_store %arg4[%c0_24, %c0_25], %52 {strides = array<i32>} : memref<8x128xf32, #tpu.memory_space<vmem>>, vector<8x128xf32>,
    } else {
    }
    return
  }
  func.func @transform_0(%arg0: i32, %arg1: i32) -> (i32, i32) {
    %c1_i32 = arith.constant 1 : i32
    %0 = arith.muli %arg0, %c1_i32 : i32
    %1 = arith.addi %0, %arg1 : i32
    %c0_i32 = arith.constant 0 : i32
    %c0_i32_0 = arith.constant 0 : i32
    return %1, %c0_i32 : i32, i32
  }
  func.func @transform_1(%arg0: i32, %arg1: i32) -> (i32, i32) {
    %c1_i32 = arith.constant 1 : i32
    %0 = arith.muli %arg0, %c1_i32 : i32
    %1 = arith.addi %0, %arg1 : i32
    %c0_i32 = arith.constant 0 : i32
    %c0_i32_0 = arith.constant 0 : i32
    return %1, %c0_i32 : i32, i32
  }
  func.func @transform_2(%arg0: i32, %arg1: i32) -> (i32, i32) {
    %c0_i32 = arith.constant 0 : i32
    %c0_i32_0 = arith.constant 0 : i32
    return %arg0, %c0_i32 : i32, i32
  }
}

</mosaic_0001>

<bundles_post_ra>
// kernel: tpu_custom_call.1
= control target key start
LH: loop header
LB: loop body
LE: loop exit
PB: predicated region body
PF: predicated region fallthrough
CT: control target
= control target key end

     0   :  { %vm67_vm0 = vcmask 261120   ;;  %s276_s0 = inlined_call_operand.vmem [shape: f32[16,32], index: 0, kind: input, shape index: {}]   ;;  %s277_s1 = inlined_call_operand.vmem [shape: s32[16,1], index: 1, kind: input, shape index: {}]   ;;  %s278_s2 = inlined_call_operand.hbm [shape: f32[8,128], index: 2, kind: output, shape index: {}]  }
   0x1   :  { %v63_v0 = vld [vmem:[%s276_s0] sm:$0xff]  ;;  %v64_v1 = vld [vmem:[%s276_s0 + $0x8] sm:$0xff] }
   0x2   :  { %7 = vsyncpa [#allocation4], 0  ;;  %v68_v2 = vsel %vm67_vm0, %v63_v0, -inf  ;;  %v71_v3 = vsel %vm67_vm0, %v64_v1, -inf  ;;  %v65_v4 = vld [vmem:[%s277_s1] sm:$0xff]  ;;  %v222_v5 = vmov 0   ;;  %v96_v19 = vlaneseq }
   0x3   :  { %69 = vmax.xlane.f32.xlu0 %v68_v2  ;;  %189 = vset.pattern.permute.xlu1 %v222_v5  ;;  %v66_v16 = vld [vmem:[%s277_s1 + $0x8] sm:$0xff]  ;;  %vm60_vm3 = vcmask 7168   ;;  %v223_v35 = vmov 0.0   ;;  %s224_s1 = smov [#allocation3]  }
   0x4   :  { %188 = vset.pattern.permute.xlu0 %v222_v5  ;;  %v97_v21 = vand.u32 127, %v96_v19  ;;  %61 = vst.msk [vmem:[#allocation2] sm:$0xff] %vm60_vm3, %v223_v35  ;;  %62 = vst.msk [vmem:[#allocation2 + $0x8] sm:$0xff] %vm60_vm3, %v223_v35  ;;  %s163_s16 = sshll.u32 %s224_s1, 4  ;;  %s164_s16 = int_to_ptr.vmem [resolvable:$true] %s163_s16 }
   0x5   :  { %s198_s19 = scalar_lea.vmem %s164_s16, 128  ;;  %p203_p1 = scmp.lt.s32.totalorder %s164_s16, %s164_s16 }
   0x6   :  { %p199_p0 = scmp.ne.s32.totalorder %s164_s16, %s198_s19  ;;  %p204_p2 = scmp.lt.s32.totalorder %s198_s19, %s198_s19 }
   0x7   :  { %72 = vmax.xlane.f32.xlu0 %v71_v3 }
   0x8   :  { %p205_p3 = por %p204_p2, %p203_p1 }
   0xa   :  { %p206_p4 = pnand %p205_p3, %p199_p0 }
   0xb   :  { %v128_v37 = vld [vmem:[#allocation2] sm:$0xff]  ;;  %v129_v41 = vld [vmem:[#allocation2 + $0x8] sm:$0xff] }
  0x1d   :  { %99 = vperm.xlu0 %188, %v65_v4  }
  0x90   :  { %v70_v6 = vpop.xlane.xlu0 %69 }
  0x91   :  { %v74_v7 = vsub.f32 %v63_v0, %v70_v6 }
  0x93   :  { %v76_v8 = vmul.f32 1.442695, %v74_v7 }
  0x94   :  { %v73_v9 = vpop.xlane.xlu0 %72 }
  0x95   :  { %190 = vpow2.f32 %v76_v8  ;;  %v75_v10 = vsub.f32 %v64_v1, %v73_v9 }
  0x97   :  { %v78_v11 = vmul.f32 1.442695, %v75_v10 }
  0x99   :  { %192 = vpow2.f32 %v78_v11 }
  0x9c   :  { %v100_v22 = vpop.permute.xlu0 %99 }
  0x9d   :  { %vm104_vm1 = vcmp.eq.s32.totalorder %v97_v21, %v100_v22 }
  0x9f   :  { %v191_v12 = vpop.eup %190 }
  0xa0   :  { %v80_v13 = vsel %vm67_vm0, %v191_v12, 0.0 }
  0xa1   :  { %81 = vadd.xlane.f32.xlu1 %v80_v13 }
  0xa3   :  { %v193_v14 = vpop.eup %192 }
  0xa4   :  { %v83_v15 = vsel %vm67_vm0, %v193_v14, 0.0 }
  0xa5   :  { %84 = vadd.xlane.f32.xlu1 %v83_v15 }
  0xb6   :  { %102 = vperm.xlu1 %189, %v66_v16  }
 0x12e   :  { %v82_v17 = vpop.xlane.xlu1 %81 }
 0x12f   :  { %194 = vrcp.f32 %v82_v17 }
 0x132   :  { %v85_v18 = vpop.xlane.xlu1 %84 }
 0x133   :  { %196 = vrcp.f32 %v85_v18 }
 0x136   :  { %v103_v26 = vpop.permute.xlu1 %102 }
 0x137   :  { %vm105_vm2 = vcmp.eq.s32.totalorder %v97_v21, %v103_v26 }
 0x139   :  { %v195_v20 = vpop.eup %194 }
 0x13a   :  { %v90_v23 = vmul.f32 %v195_v20, %v191_v12 }
 0x13c   :  { %v92_v24 = vmax.f32 %v90_v23, 1e-07 }
 0x13d   :  { %v197_v25 = vpop.eup %196 }
 0x13e   :  { %v94_v27 = vmin.f32 %v92_v24, 1.0  ;;  %v91_v28 = vmul.f32 %v197_v25, %v193_v14 }
 0x140   :  { %v106_v29 = vsel %vm104_vm1, 0.0, %v94_v27  ;;  %v93_v30 = vmax.f32 %v91_v28, 1e-07 }
 0x141   :  { %v108_v31 = vsel %vm67_vm0, %v106_v29, 0.0 }
 0x142   :  { %109 = vadd.xlane.f32.xlu1 %v108_v31  ;;  %v95_v32 = vmin.f32 %v93_v30, 1.0 }
 0x144   :  { %v107_v33 = vsel %vm105_vm2, 0.0, %v95_v32 }
 0x145   :  { %v111_v34 = vsel %vm67_vm0, %v107_v33, 0.0 }
 0x146   :  { %112 = vadd.xlane.f32.xlu0 %v111_v34 }
 0x1cf   :  { %v110_v36 = vpop.xlane.xlu1 %109 }
 0x1d0   :  { %v114_v38 = vmul.f32 9.2103405, %v110_v36 }
 0x1d2   :  { %v130_v39 = vadd.f32 %v128_v37, %v114_v38 }
 0x1d3   :  { %v113_v40 = vpop.xlane.xlu0 %112 }
 0x1d4   :  { %133 = vst.msk [vmem:[#allocation2] sm:$0xff] %vm60_vm3, %v130_v39  ;;  %v115_v42 = vmul.f32 9.2103405, %v113_v40 }
 0x1d6   :  { %v131_v43 = vadd.f32 %v129_v41, %v115_v42 }
 0x1d8   :  { %134 = vst.msk [vmem:[#allocation2 + $0x8] sm:$0xff] %vm60_vm3, %v131_v43 }
 0x1db   :  { %v138_v44 = vld [vmem:[#allocation2] sm:$0xff] }
 0x1dc   :  { %v140_v46 = vsel %vm60_vm3, %v138_v44, 0.0 }
 0x1df   :  { %v139_v45 = vld [vmem:[#allocation2 + $0x8] sm:$0xff] }
 0x1e0   :  { %v141_v47 = vsel %vm60_vm3, %v139_v45, 0.0 }
 0x1e1   :  { %v142_v48 = vadd.f32 %v141_v47, %v140_v46 }
 0x1e3   :  { %143 = vadd.xlane.f32.xlu1 %v142_v48 }
 0x270   :  { %v144_v49 = vpop.xlane.xlu1 %143 }
 0x271   :  { %v145_v50 = vrot.slane %v144_v49, 4 }
 0x273   :  { %v146_v51 = vadd.f32 %v145_v50, %v144_v49 }
 0x275   :  { %v147_v52 = vrot.slane %v146_v51, 2 }
 0x277   :  { %v148_v53 = vadd.f32 %v147_v52, %v146_v51 }
 0x279   :  { %v149_v54 = vrot.slane %v148_v53, 1 }
 0x27b   :  { %v150_v55 = vadd.f32 %v149_v54, %v148_v53 }
 0x27d   :  { %183 = vpush %v150_v55 }
 0x2ae   :  { %s184_s17 = spop %183 }
 0x2af   :  { %s154_s18 = smul.f32 0.0625, %s184_s17 }
 0x2b1   :  { %v155_v56 = vstv %s154_s18 }
 0x2b2   :  { %156 = vst [vmem:[#allocation3] sm:$0xff] %v155_v56 }
 0x2b3   :  { %209 = shalt.err (!%p206_p4)
}
 0x2b4   :  { %s210_s22 = scalar_lea.hbm %s278_s2, 128 }
 0x2b5   :  { %p211_p5 = scmp.ne.s32.totalorder %s278_s2, %s210_s22  ;;  %p214_p6 = scmp.lt.u32.totalorder %s210_s22, %s278_s2 }
 0x2b7   :  { %p216_p7 = pnand %p214_p6, %p211_p5 }
 0x2b9   :  { %219 = shalt.err (!%p216_p7)
}
 0x2ba   :  { %166 = dma.vmem_to_hbm [thread:$0]  %s164_s16, 128, %s278_s2, [#allocation4]  }
 0x2bb   :  { %220 = dma.done.wait [#allocation4], 128  }
 0x2bc   :  { %221 = vsyncadd [#allocation4], 4294967168 }
 0x2bd   :  { %170 = vsyncpa [#allocation4], 1 }

</bundles_post_ra>
